<compile_context>
chip_gen: v6e
topology: v6e:2x2x1
jax: 0.10.0
libtpu: 0.0.40
codegen_flags: <defaults>
</compile_context>

<pallas_src>
import jax
import jax.numpy as jnp
from jax.experimental import pallas as pl
from jax.experimental.pallas import tpu as pltpu

LANES = 1024            # lane-dense slab width (multiple of 128)
TILE_M = 256            # rows / block; multiple of 32 (u8 packed tiling).
                        # per-step VMEM: 256*1024*(4 in + 1 u8 out + 4 f32 out)
                        # = 2.25 MiB, x2 buffers = 4.5 MiB -> fits all scoped
                        # VMEM defaults (v5e 16 MiB / v6e 32 MiB / v7x 32 MiB).


def _compress_kernel(lr_ref, quant_ref, recon_ref):
    """Quantize to the [0,255] uint8 grid and dequantize back to [0,1] floats."""
    x = lr_ref[...]                                   # f32 (tile_m, 1024)
    scaled = (x + 1.0) * 127.5                        # de-normalize
    q = jnp.clip(jnp.round(scaled), 0.0, 255.0)       # uint8 quantization grid
    quant_ref[...] = q.astype(jnp.uint8)              # integer codes (disk image)
    recon_ref[...] = q * (1.0 / 255.0)                # torchvision ToTensor(): u8 / 255


def _compress_pallas(x2d):
    m, lanes = x2d.shape
    assert lanes == LANES
    # Single whole-array block for tiny inputs (block == array dims is always
    # legal); otherwise TILE_M-row blocks with masked partial last block.
    tile_m = m if m < TILE_M else TILE_M
    grid_m = pl.cdiv(m, tile_m)
    return pl.pallas_call(
        _compress_kernel,
        out_shape=(
            jax.ShapeDtypeStruct((m, lanes), jnp.uint8),
            jax.ShapeDtypeStruct((m, lanes), jnp.float32),
        ),
        grid_spec=pltpu.PrefetchScalarGridSpec(
            num_scalar_prefetch=0,
            grid=(grid_m,),
            in_specs=[pl.BlockSpec((tile_m, lanes), lambda i: (i, 0))],
            out_specs=[
                pl.BlockSpec((tile_m, lanes), lambda i: (i, 0)),
                pl.BlockSpec((tile_m, lanes), lambda i: (i, 0)),
            ],
        ),
        compiler_params=pltpu.CompilerParams(
            dimension_semantics=("parallel",)),   # lets v7x shard over both TCs
    )(x2d)


def compress_normal(lr, idx=0, level=3):
    """JAX/Pallas equivalent of Compress_normal.forward.

    Args:
      lr: (N, C, H, W) float32 in [-1, 1]   (NCHW, matching PyTorch)
    Returns:
      (lr_recon, quant_u8, bits)
        lr_recon : (N, C, H, W) float32 in [0, 1]  — the image that would be
                   handed to the GMM codec after the uint8 round-trip.
        quant_u8 : (N, C, H, W) uint8 integer codes (what was written to disk).
        bits     : int32 placeholder bit-count of the uint8 image.
    """
    n, c, h, w = lr.shape
    total = n * c * h * w

    # glue: flatten to a lane-dense (M, 1024) slab; pad only when needed
    # (reshape of a contiguous array is metadata-only, no HBM pass).
    flat = lr.reshape(-1).astype(jnp.float32)
    pad = (-total) % LANES
    if pad:
        flat = jnp.pad(flat, (0, pad))
    x2d = flat.reshape(-1, LANES)

    quant2d_u8, recon2d = _compress_pallas(x2d)

    if pad:
        quant_u8 = quant2d_u8.reshape(-1)[:total].reshape(n, c, h, w)
        lr_recon = recon2d.reshape(-1)[:total].reshape(n, c, h, w)
    else:
        quant_u8 = quant2d_u8.reshape(n, c, h, w)
        lr_recon = recon2d.reshape(n, c, h, w)

    # TODO(synk): GMM_compression.use_GMM_com (pretrained learned codec, disk/PIL
    # I/O) has no Pallas equivalent; `bits` is the raw uint8 storage bit-count.
    bits = jnp.int32(total * 8)
    return lr_recon, quant_u8, bits


if __name__ == "__main__":
    key = jax.random.PRNGKey(0)
    # Small NCHW image batch, matching the PyTorch conv convention.
    lr = jax.random.uniform(key, (2, 4, 16, 16), jnp.float32, minval=-1.0, maxval=1.0)

    lr_recon, quant_u8, bits = jax.jit(compress_normal)(lr)
    jax.block_until_ready(lr_recon)
    jax.block_until_ready(quant_u8)

    # sanity check against a pure-JAX reference of the quantize/dequantize path
    ref_q = jnp.clip(jnp.round((lr + 1.0) * 127.5), 0.0, 255.0)
    assert jnp.array_equal(quant_u8.astype(jnp.float32), ref_q)
    assert jnp.allclose(lr_recon, ref_q / 255.0, atol=1e-6)

    print("KERNEL_OK")
</pallas_src>

<mosaic_0001>
module attributes {stable_mosaic.version = 11 : i64} {
  func.func @_compress_kernel(%arg0: i32, %arg1: memref<2x1024xf32, #tpu.memory_space<vmem>>, %arg2: memref<2x1024xi8, #tpu.memory_space<vmem>>, %arg3: memref<2x1024xf32, #tpu.memory_space<vmem>>) attributes {dimension_semantics = [#tpu.dimension_semantics<parallel>], iteration_bounds = array<i64: 1>, scalar_prefetch = 0 : i64, scratch_operands = 0 : i64, tpu.core_type = #tpu.core_type<tc>, window_params = [{transform_indices = @transform_0, window_bounds = array<i64: 2, 1024>}, {transform_indices = @transform_1, window_bounds = array<i64: 2, 1024>}, {transform_indices = @transform_2, window_bounds = array<i64: 2, 1024>}]} {
    %c0 = arith.constant 0 : index
    %c0_0 = arith.constant 0 : index
    %0 = vector.load %arg1[%c0, %c0_0] : memref<2x1024xf32, #tpu.memory_space<vmem>>, vector<2x1024xf32>
    %cst = arith.constant 1.000000e+00 : f32
    %1 = vector.broadcast %cst : f32 to vector<2x1024xf32>
    %2 = arith.addf %0, %1 : vector<2x1024xf32>
    %cst_1 = arith.constant 1.275000e+02 : f32
    %3 = vector.broadcast %cst_1 : f32 to vector<2x1024xf32>
    %4 = arith.mulf %2, %3 : vector<2x1024xf32>
    %5 = math.roundeven %4 : vector<2x1024xf32>
    %cst_2 = arith.constant 0.000000e+00 : f32
    %cst_3 = arith.constant 2.550000e+02 : f32
    %6 = vector.broadcast %cst_2 : f32 to vector<2x1024xf32>
    %7 = arith.maximumf %6, %5 : vector<2x1024xf32>
    %8 = vector.broadcast %cst_3 : f32 to vector<2x1024xf32>
    %9 = arith.minimumf %8, %7 : vector<2x1024xf32>
    %10 = arith.fptoui %9 : vector<2x1024xf32> to vector<2x1024xi8>
    %c0_4 = arith.constant 0 : index
    %c0_5 = arith.constant 0 : index
    %11 = vector.load %arg2[%c0_4, %c0_5] : memref<2x1024xi8, #tpu.memory_space<vmem>>, vector<2x1024xi8>
    tpu.vector_store %arg2[%c0_4, %c0_5], %10 {strides = array<i32>} : memref<2x1024xi8, #tpu.memory_space<vmem>>, vector<2x1024xi8>,
    %cst_6 = arith.constant 0.00392156886 : f32
    %12 = vector.broadcast %cst_6 : f32 to vector<2x1024xf32>
    %13 = arith.mulf %9, %12 : vector<2x1024xf32>
    %c0_7 = arith.constant 0 : index
    %c0_8 = arith.constant 0 : index
    %14 = vector.load %arg3[%c0_7, %c0_8] : memref<2x1024xf32, #tpu.memory_space<vmem>>, vector<2x1024xf32>
    tpu.vector_store %arg3[%c0_7, %c0_8], %13 {strides = array<i32>} : memref<2x1024xf32, #tpu.memory_space<vmem>>, vector<2x1024xf32>,
    return
  }
  func.func @transform_0(%arg0: i32) -> (i32, i32) {
    %c0_i32 = arith.constant 0 : i32
    %c0_i32_0 = arith.constant 0 : i32
    return %arg0, %c0_i32 : i32, i32
  }
  func.func @transform_1(%arg0: i32) -> (i32, i32) {
    %c0_i32 = arith.constant 0 : i32
    %c0_i32_0 = arith.constant 0 : i32
    return %arg0, %c0_i32 : i32, i32
  }
  func.func @transform_2(%arg0: i32) -> (i32, i32) {
    %c0_i32 = arith.constant 0 : i32
    %c0_i32_0 = arith.constant 0 : i32
    return %arg0, %c0_i32 : i32, i32
  }
}

</mosaic_0001>

<bundles_post_ra>
// kernel: compress_normal.1
= control target key start
LH: loop header
LB: loop body
LE: loop exit
PB: predicated region body
PF: predicated region fallthrough
CT: control target
= control target key end

     0   :  { %v32_v0 = vlaneseq  ;;  %vm127_vm0 = vcmask 1040384   ;;  %v207_v3 = vmov 1983009808   ;;  %v208_v5 = vmov 1966171168   ;;  %s328_s0 = inlined_call_operand.vmem [shape: f32[2,1024], index: 0, kind: input, shape index: {}]   ;;  %s329_s2 = inlined_call_operand.vmem [shape: f32[2,1024], index: 2, kind: output, shape index: {1}]   ;;  %s330_s1 = inlined_call_operand.vmem [shape: u8[2,1024], index: 1, kind: output, shape index: {0}]  }
   0x1   :  { %v10_v1 = vld [vmem:[%s328_s0] sm:$0xff]  ;;  %v11_v2 = vld [vmem:[%s328_s0 + $0x8] sm:$0xff]  ;;  %v30_v4 = vunpack.c.l.s4 %v207_v3  ;;  %v83_v6 = vunpack.c.l.s4 %v208_v5  ;;  %vm128_vm1 = vsmask.f32 256  ;;  %vm130_vm2 = vcmask 1041409  }
   0x2   :  { %v12_v7 = vadd.f32 1.0, %v10_v1  ;;  %v13_v8 = vadd.f32 1.0, %v11_v2  ;;  %v33_v9 = vshrl.u32 %v32_v0, 7  ;;  %vm230_vm3 = vmand %vm127_vm0, %vm128_vm1  ;;  %vm131_vm4 = vsmask.f32 1280 }
   0x3   :  { %v31_v11 = vunpack.c.0.s8 %v30_v4  ;;  %v84_v12 = vunpack.c.0.s8 %v83_v6  ;;  %vm132_vm5 = vmand %vm130_vm2, %vm131_vm4  ;;  %vm134_vm6 = vcmask 1042434   ;;  %vm135_vm7 = vsmask.f32 2304 }
   0x4   :  { %v234_v13 = vmul.f32 127.5, %v12_v7  ;;  %v236_v14 = vmul.f32 127.5, %v13_v8  ;;  %vm133_vm8 = vmor %vm132_vm5, %vm230_vm3  ;;  %vm138_vm9 = vcmask 1043459   ;;  %vm139_vm10 = vsmask.f32 3328 }
   0x5   :  { %v34_v15 = vsub.s32 %v31_v11, %v33_v9  ;;  %v240_v16 = vsub.s32 %v84_v12, %v33_v9  ;;  %vm136_vm11 = vmand %vm134_vm6, %vm135_vm7  ;;  %vm142_vm13 = vcmask 1044484   ;;  %vm143_vm14 = vsmask.f32 4352 }
   0x6   :  { %v175_v17 = vclamp-gez-f32 %v234_v13, 255.0  ;;  %v177_v18 = vclamp-gez-f32 %v236_v14, 255.0  ;;  %vm244_vm12 = vmor %vm136_vm11, %vm133_vm8  ;;  %vm146_vm0 = vcmask 1045509   ;;  %vm147_vm1 = vsmask.f32 5376 }
   0x7   :  { %vm248_vm15 = vmand %vm138_vm9, %vm139_vm10  ;;  %vm150_vm2 = vcmask 1046534   ;;  %vm151_vm3 = vsmask.f32 6400  ;;  %v183_v23 = vand.u32 2147483647, %v234_v13  ;;  %v185_v24 = vcvt.f32.s32 %v234_v13 }
   0x8   :  { %v201_v21 = vcvt.f32.s32 %v175_v17  ;;  %v204_v22 = vcvt.f32.s32 %v177_v18  ;;  %vm141_vm4 = vmor %vm248_vm15, %vm244_vm12  ;;  %v188_v25 = vand.u32 2147483648, %v234_v13  ;;  %v191_v26 = vand.u32 2147483647, %v236_v14 }
   0x9   :  { %v193_v27 = vcvt.f32.s32 %v236_v14  ;;  %v196_v28 = vand.u32 2147483648, %v236_v14  ;;  %vm144_vm5 = vmand %vm142_vm13, %vm143_vm14  ;;  %vm264_vm6 = vcmp.lt.f32.partialorder %v183_v23, 8388608.0  ;;  %v186_v34 = vcvt.s32.f32 %v185_v24 }
   0xa   :  { %v28_v29 = vcombine.high %v201_v21, %v201_v21  ;;  %v35_v30 = vrot.slane %v201_v21, %v34_v15  ;;  %v45_v31 = vcombine.high %v204_v22, %v204_v22  ;;  %v52_v32 = vrot.slane %v204_v22, %v34_v15  ;;  %vm277_vm8 = vmor %vm144_vm5, %vm141_vm4 }
   0xb   :  { %vm268_vm7 = vcmp.lt.f32.partialorder %v191_v26, 8388608.0  ;;  %v194_v36 = vcvt.s32.f32 %v193_v27  ;;  %v187_v44 = vand.u32 2147483647, %v186_v34  ;;  %vm283_vm9 = vmand %vm146_vm0, %vm147_vm1  ;;  %vm154_vm12 = vcmask 1047559  }
   0xc   :  { %v42_v37 = vrot.slane %v28_v29, %v34_v15  ;;  %v43_v38 = vcombine.high %v35_v30, %v35_v30  ;;  %v59_v39 = vrot.slane %v45_v31, %v34_v15  ;;  %v60_v40 = vcombine.high %v52_v32, %v52_v32  ;;  %vm149_vm10 = vmor %vm283_vm9, %vm277_vm8 }
   0xd   :  { %v62_v41 = vpack.c.b16 %v35_v30, %v35_v30  ;;  %v70_v42 = vpack.c.b16 %v52_v32, %v52_v32  ;;  %v195_v45 = vand.u32 2147483647, %v194_v36  ;;  %v189_v53 = vor.u32 %v188_v25, %v187_v44  ;;  %vm152_vm11 = vmand %vm150_vm2, %vm151_vm3 }
   0xe   :  { %v44_v46 = vcombine.high %v42_v37, %v42_v37  ;;  %v61_v47 = vcombine.high %v59_v39, %v59_v39  ;;  %v64_v48 = vpack.c.b16 %v43_v38, %v43_v38  ;;  %v66_v49 = vpack.c.b16 %v42_v37, %v42_v37  ;;  %vm308_vm14 = vmor %vm152_vm11, %vm149_vm10 }
   0xf   :  { %v72_v51 = vpack.c.b16 %v60_v40, %v60_v40  ;;  %v74_v52 = vpack.c.b16 %v59_v39, %v59_v39  ;;  %v197_v54 = vor.u32 %v196_v28, %v195_v45  ;;  %v190_v59 = vsel %vm264_vm6, %v189_v53, %v234_v13 }
  0x10   :  { %v68_v55 = vpack.c.b16 %v44_v46, %v44_v46  ;;  %v76_v56 = vpack.c.b16 %v61_v47, %v61_v47  ;;  %v179_v57 = vpack.c.b8 %v64_v48, %v62_v41  ;;  %v18_v0 = vmax.f32 %v190_v59, 0.0 }
  0x11   :  { %v181_v58 = vpack.c.b8 %v72_v51, %v70_v42  ;;  %v198_v60 = vsel %vm268_vm7, %v197_v54, %v236_v14  ;;  %vm155_vm13 = vsmask.f32 7424  ;;  %v158_v14 = vld [vmem:[%s330_s1] sm:$0xff] }
  0x12   :  { %v180_v61 = vpack.c.b8 %v68_v55, %v66_v49  ;;  %v182_v62 = vpack.c.b8 %v76_v56, %v74_v52  ;;  %v88_v63 = vrot.slane %v179_v57, %v240_v16  ;;  %v19_v2 = vmax.f32 %v198_v60, 0.0  ;;  %vm156_vm15 = vmand %vm154_vm12, %vm155_vm13 }
  0x13   :  { %v102_v1 = vrot.slane %v181_v58, %v240_v16  ;;  %v20_v5 = vmin.f32 %v18_v0, 255.0  ;;  %vm157_vm0 = vmor %vm156_vm15, %vm308_vm14 }
  0x14   :  { %v95_v3 = vrot.slane %v180_v61, %v240_v16  ;;  %v109_v4 = vrot.slane %v182_v62, %v240_v16  ;;  %v21_v7 = vmin.f32 %v19_v2, 255.0 }
  0x15   :  { %v161_v10 = vmul.f32 0.003921569, %v20_v5 }
  0x16   :  { %v110_v8 = vcombine.low %v88_v63, %v95_v3  ;;  %v111_v9 = vcombine.low %v102_v1, %v109_v4  ;;  %v162_v11 = vmul.f32 0.003921569, %v21_v7 }
  0x17   :  { %163 = vst [vmem:[%s329_s2] sm:$0xff] %v161_v10 }
  0x18   :  { %v118_v12 = vrot.slane %v110_v8, %v240_v16  ;;  %v125_v13 = vrot.slane %v111_v9, %v240_v16  ;;  %164 = vst [vmem:[%s329_s2 + $0x8] sm:$0xff] %v162_v11 }
  0x1a   :  { %v126_v15 = vcombine.low %v118_v12, %v125_v13 }
  0x1c   :  { %v159_v17 = vsel %vm157_vm0, %v126_v15, %v158_v14 }
  0x1d   :  { %160 = vst [vmem:[%s330_s1] sm:$0xff] %v159_v17 }

</bundles_post_ra>
